<compile_context>
chip_gen: v7x
topology: tpu7x:2x2x1
jax: 0.10.0
libtpu: 0.0.40
codegen_flags: <defaults>
</compile_context>

<pallas_src>
import functools

import jax
import jax.numpy as jnp
from jax.experimental import pallas as pl
from jax.experimental.pallas import tpu as pltpu


def _round_up(x, m):
    return (x + m - 1) // m * m


def _vmem_capacity_bytes():
    try:
        return int(pltpu.get_tpu_info().vmem_capacity_bytes)
    except Exception:
        return 64 * 1024 * 1024  # conservative (v7x per-TC); safe everywhere


def grn_kernel(*refs, has_context):
    if has_context:
        (a_ref, c_ref, w2_ref, w3_ref, w14_ref, w15_ref,
         b2_ref, b14_ref, b15_ref, gamma_ref, beta_ref, o_ref) = refs
    else:
        (a_ref, w2_ref, w14_ref, w15_ref,
         b2_ref, b14_ref, b15_ref, gamma_ref, beta_ref, o_ref) = refs
        c_ref = w3_ref = None

    a = a_ref[...]                                     # native dtype (residual path)
    cdt = w2_ref.dtype                                 # MXU compute dtype

    # eta2 = elu(a @ W2t (+ c @ W3t) + b2)  -- f32 accumulation on the MXU.
    pre = jnp.dot(a.astype(cdt), w2_ref[...], preferred_element_type=jnp.float32)
    if has_context:
        pre = pre + jnp.dot(c_ref[...].astype(cdt), w3_ref[...],
                            preferred_element_type=jnp.float32)
    pre = pre + b2_ref[...]

    # ELU(alpha=1). Cancellation-free expm1 on the negative branch without relying
    # on a lax.expm1 lowering: 6th-order Taylor on (-0.5, 0], exp(x)-1 otherwise
    # (|expm1(x)| >= 0.39 there, so no cancellation).
    xm = jnp.minimum(pre, 0.0)
    poly = xm * (1.0 + xm * (0.5 + xm * (1.0 / 6.0 + xm * (1.0 / 24.0
                + xm * (1.0 / 120.0 + xm * (1.0 / 720.0))))))
    em1 = jnp.where(xm > -0.5, poly, jnp.exp(xm) - 1.0)
    eta2 = jnp.where(pre > 0.0, pre, em1)

    # Folded GLU: eta1 matmul eliminated (W14 = W1t@W4t, W15 = W1t@W5t, fused biases).
    eta2_c = eta2.astype(cdt)
    gate = jax.nn.sigmoid(
        jnp.dot(eta2_c, w14_ref[...], preferred_element_type=jnp.float32) + b14_ref[...])
    val = jnp.dot(eta2_c, w15_ref[...], preferred_element_type=jnp.float32) + b15_ref[...]
    glu = gate * val                                   # dropout: inference no-op

    # Residual + LayerNorm in f32 on the un-rounded input.
    x = a.astype(jnp.float32) + glu
    mean = jnp.mean(x, axis=-1, keepdims=True)
    centered = x - mean
    var = jnp.mean(centered * centered, axis=-1, keepdims=True)
    y = centered * jax.lax.rsqrt(var + 1e-5)
    o_ref[...] = (y * gamma_ref[...] + beta_ref[...]).astype(o_ref.dtype)


def prepare_grn_weights(params, *, compute_dtype=jnp.bfloat16, has_context=True):
    """Fold W1 into the GLU projections and cast weights for the kernel.

    Two d x d matmuls + transposes/casts. For repeated forward calls with the same
    parameters, call this once and pass the result to grn_apply() directly.
    Folding is done in f32, then cast to compute_dtype."""
    w1t = params["W1"].T
    prep = {
        "w2t": params["W2"].T.astype(compute_dtype),
        "w14t": (w1t @ params["W4"].T).astype(compute_dtype),
        "w15t": (w1t @ params["W5"].T).astype(compute_dtype),
        "b2": params["b2"].reshape(1, -1).astype(jnp.float32),
        "b14": (params["b1"] @ params["W4"].T + params["b4"]).reshape(1, -1).astype(jnp.float32),
        "b15": (params["b1"] @ params["W5"].T + params["b5"]).reshape(1, -1).astype(jnp.float32),
        "gamma": params["ln_gamma"].reshape(1, -1).astype(jnp.float32),
        "beta": params["ln_beta"].reshape(1, -1).astype(jnp.float32),
    }
    if has_context:
        prep["w3t"] = params["W3"].T.astype(compute_dtype)
    return prep


@functools.partial(jax.jit, static_argnames=("tm",))
def grn_apply(a, c, prep, *, tm=None):
    """a: (..., d); c: same shape or None; prep: prepare_grn_weights() output."""
    has_context = c is not None
    orig_shape = a.shape
    d = orig_shape[-1]
    a2 = a.reshape(-1, d)
    c2 = None if c is None else c.reshape(-1, d)
    n = a2.shape[0]

    # ---- generation-aware tile / VMEM selection (all trace-time Python) ----
    capacity = _vmem_capacity_bytes()
    cap = (capacity * 3) // 4                      # leave headroom for compiler scratch
    cbytes = jnp.dtype(prep["w2t"].dtype).itemsize
    io_bytes = jnp.dtype(a2.dtype).itemsize
    dl = _round_up(d, 128)                         # VMEM lane footprint of width-d tiles
    n_w = 4 if has_context else 3
    w_resident = n_w * _round_up(d, 16) * dl * cbytes   # single-buffered weights

    def vmem_est(tm_):
        vecs = 5 * 8 * dl * 4                                      # bias/affine rows
        acts = 2 * tm_ * dl * io_bytes * (2 if has_context else 1)  # dbl-buffered in
        outs = 2 * tm_ * dl * io_bytes                              # dbl-buffered out
        interm = 8 * tm_ * dl * 4                                   # live f32 temps
        return w_resident + vecs + acts + outs + interm

    if tm is None:
        base = 512 if capacity >= (96 << 20) else 256      # bigger tiles on 128 MiB VMEM
        if w_resident > cap // 2:
            base = 128                                     # huge d: shrink row tile
        # >= 2 blocks whenever possible so both v7x TensorCores get work.
        tm = min(base, max(8, _round_up(pl.cdiv(n, 2), 8)))
    tm = max(8, _round_up(tm, 8))
    while vmem_est(tm) > cap and tm > 64:
        tm = max(64, tm // 2)
    vmem_limit = int(min(max(vmem_est(tm) * 5 // 4, 32 << 20), cap))

    row_spec = pl.BlockSpec((tm, d), lambda i: (i, 0))
    w_spec = pl.BlockSpec((d, d), lambda i: (0, 0), pipeline_mode=pl.Buffered(1))
    v_spec = pl.BlockSpec((1, d), lambda i: (0, 0), pipeline_mode=pl.Buffered(1))

    if has_context:
        operands = (a2, c2, prep["w2t"], prep["w3t"], prep["w14t"], prep["w15t"],
                    prep["b2"], prep["b14"], prep["b15"], prep["gamma"], prep["beta"])
        in_specs = [row_spec, row_spec, w_spec, w_spec, w_spec, w_spec,
                    v_spec, v_spec, v_spec, v_spec, v_spec]
    else:
        operands = (a2, prep["w2t"], prep["w14t"], prep["w15t"],
                    prep["b2"], prep["b14"], prep["b15"], prep["gamma"], prep["beta"])
        in_specs = [row_spec, w_spec, w_spec, w_spec,
                    v_spec, v_spec, v_spec, v_spec, v_spec]

    out = pl.pallas_call(
        functools.partial(grn_kernel, has_context=has_context),
        out_shape=jax.ShapeDtypeStruct((n, d), a2.dtype),
        grid_spec=pltpu.PrefetchScalarGridSpec(
            num_scalar_prefetch=0,
            grid=(pl.cdiv(n, tm),),        # ragged last block: garbage rows masked out
            in_specs=in_specs,
            out_specs=pl.BlockSpec((tm, d), lambda i: (i, 0)),
        ),
        compiler_params=pltpu.CompilerParams(
            dimension_semantics=("parallel",),
            vmem_limit_bytes=vmem_limit),
    )(*operands)

    return out.reshape(orig_shape)


def grn_forward(a, c, params, *, tm=None, compute_dtype=jnp.bfloat16):
    """Convenience wrapper: prepares (folds/casts) weights every call.
    For repeated calls with fixed params, hoist prepare_grn_weights() and call
    grn_apply() directly."""
    prep = prepare_grn_weights(params, compute_dtype=compute_dtype,
                               has_context=c is not None)
    return grn_apply(a, c, prep, tm=tm)


def init_params(key, d_model):
    ks = jax.random.split(key, 9)
    return {
        "W1": jax.random.normal(ks[0], (d_model, d_model), jnp.float32),
        "b1": jax.random.normal(ks[1], (d_model,), jnp.float32),
        "W2": jax.random.normal(ks[2], (d_model, d_model), jnp.float32),
        "W3": jax.random.normal(ks[3], (d_model, d_model), jnp.float32),
        "b2": jax.random.normal(ks[4], (d_model,), jnp.float32),
        # GLU_custom: gate + value linear layers
        "W4": jax.random.normal(ks[5], (d_model, d_model), jnp.float32) * 0.1,
        "b4": jax.random.normal(ks[6], (d_model,), jnp.float32) * 0.1,
        "W5": jax.random.normal(ks[7], (d_model, d_model), jnp.float32) * 0.1,
        "b5": jax.random.normal(ks[8], (d_model,), jnp.float32) * 0.1,
        # LayerNorm affine (PyTorch default init)
        "ln_gamma": jnp.ones((d_model,), jnp.float32),
        "ln_beta": jnp.zeros((d_model,), jnp.float32),
    }


def grn_reference(a, c, p):
    """Pure-JAX reference matching the PyTorch module."""
    eta2 = jax.nn.elu(a @ p["W2"].T + c @ p["W3"].T + p["b2"])
    eta1 = eta2 @ p["W1"].T + p["b1"]
    glu = jax.nn.sigmoid(eta1 @ p["W4"].T + p["b4"]) * (eta1 @ p["W5"].T + p["b5"])
    x = a + glu
    mean = jnp.mean(x, axis=-1, keepdims=True)
    var = jnp.mean((x - mean) ** 2, axis=-1, keepdims=True)
    return (x - mean) / jnp.sqrt(var + 1e-5) * p["ln_gamma"] + p["ln_beta"]


if __name__ == "__main__":
    key = jax.random.PRNGKey(0)
    d_model = 32
    batch, seq = 2, 8

    k_a, k_c, k_p = jax.random.split(key, 3)
    a = jax.random.normal(k_a, (batch, seq, d_model), jnp.float32)
    c = jax.random.normal(k_c, (batch, seq, d_model), jnp.float32)
    params = init_params(k_p, d_model)
    ref = grn_reference(a, c, params)

    # f32 compute path: tight check against the reference.
    out_f32 = grn_forward(a, c, params, compute_dtype=jnp.float32)
    jax.block_until_ready(out_f32)
    assert out_f32.shape == a.shape and out_f32.dtype == a.dtype
    assert jnp.allclose(out_f32, ref, atol=1e-3, rtol=1e-3), \
        f"f32 max abs err {jnp.max(jnp.abs(out_f32 - ref))}"

    # Default perf path (bf16 MXU operands, f32 accumulation, f32 residual/LN on the
    # un-rounded input): tighter-than-before statistical check.
    out_bf16 = grn_forward(a, c, params)
    jax.block_until_ready(out_bf16)
    abs_err = jnp.abs(out_bf16 - ref)
    assert jnp.all(jnp.isfinite(out_bf16))
    assert float(jnp.max(abs_err)) < 0.35, f"bf16 max abs err {float(jnp.max(abs_err))}"
    assert float(jnp.mean(abs_err)) < 0.05, f"bf16 mean abs err {float(jnp.mean(abs_err))}"

    # c=None fast path: no zeros materialized, no c DMA, W3 matmul skipped.
    out_nc = grn_forward(a, None, params, compute_dtype=jnp.float32)
    jax.block_until_ready(out_nc)
    ref_nc = grn_reference(a, jnp.zeros_like(a), params)
    assert jnp.allclose(out_nc, ref_nc, atol=1e-3, rtol=1e-3)

    # Ragged multi-tile grid: n = 4*160 = 640 rows, tm=256 -> 3 blocks, last one partial.
    a_big = jax.random.normal(k_a, (4, 160, d_model), jnp.float32)
    c_big = jax.random.normal(k_c, (4, 160, d_model), jnp.float32)
    out_big = grn_forward(a_big, c_big, params, tm=256, compute_dtype=jnp.float32)
    jax.block_until_ready(out_big)
    assert jnp.allclose(out_big, grn_reference(a_big, c_big, params),
                        atol=1e-3, rtol=1e-3)

    print("KERNEL_OK")
</pallas_src>

<mosaic_0001>
module attributes {stable_mosaic.version = 11 : i64} {
  func.func @grn_kernel(%arg0: i32, %arg1: memref<8x32xf32, #tpu.memory_space<vmem>>, %arg2: memref<8x32xf32, #tpu.memory_space<vmem>>, %arg3: memref<32x32xf32, #tpu.memory_space<vmem>>, %arg4: memref<32x32xf32, #tpu.memory_space<vmem>>, %arg5: memref<32x32xf32, #tpu.memory_space<vmem>>, %arg6: memref<32x32xf32, #tpu.memory_space<vmem>>, %arg7: memref<1x32xf32, #tpu.memory_space<vmem>>, %arg8: memref<1x32xf32, #tpu.memory_space<vmem>>, %arg9: memref<1x32xf32, #tpu.memory_space<vmem>>, %arg10: memref<1x32xf32, #tpu.memory_space<vmem>>, %arg11: memref<1x32xf32, #tpu.memory_space<vmem>>, %arg12: memref<8x32xf32, #tpu.memory_space<vmem>>) attributes {dimension_semantics = [#tpu.dimension_semantics<parallel>], iteration_bounds = array<i64: 2>, scalar_prefetch = 0 : i64, scratch_operands = 0 : i64, tpu.core_type = #tpu.core_type<tc>, window_params = [{transform_indices = @transform_0, window_bounds = array<i64: 8, 32>}, {transform_indices = @transform_1, window_bounds = array<i64: 8, 32>}, {pipeline_mode = #tpu.pipeline_mode<synchronous>, transform_indices = @transform_2, window_bounds = array<i64: 32, 32>}, {pipeline_mode = #tpu.pipeline_mode<synchronous>, transform_indices = @transform_3, window_bounds = array<i64: 32, 32>}, {pipeline_mode = #tpu.pipeline_mode<synchronous>, transform_indices = @transform_4, window_bounds = array<i64: 32, 32>}, {pipeline_mode = #tpu.pipeline_mode<synchronous>, transform_indices = @transform_5, window_bounds = array<i64: 32, 32>}, {pipeline_mode = #tpu.pipeline_mode<synchronous>, transform_indices = @transform_6, window_bounds = array<i64: 1, 32>}, {pipeline_mode = #tpu.pipeline_mode<synchronous>, transform_indices = @transform_7, window_bounds = array<i64: 1, 32>}, {pipeline_mode = #tpu.pipeline_mode<synchronous>, transform_indices = @transform_8, window_bounds = array<i64: 1, 32>}, {pipeline_mode = #tpu.pipeline_mode<synchronous>, transform_indices = @transform_9, window_bounds = array<i64: 1, 32>}, {pipeline_mode = #tpu.pipeline_mode<synchronous>, transform_indices = @transform_10, window_bounds = array<i64: 1, 32>}, {transform_indices = @transform_11, window_bounds = array<i64: 8, 32>}]} {
    %c0 = arith.constant 0 : index
    %c0_0 = arith.constant 0 : index
    %0 = vector.load %arg1[%c0, %c0_0] : memref<8x32xf32, #tpu.memory_space<vmem>>, vector<8x32xf32>
    %c0_1 = arith.constant 0 : index
    %c0_2 = arith.constant 0 : index
    %1 = vector.load %arg3[%c0_1, %c0_2] : memref<32x32xf32, #tpu.memory_space<vmem>>, vector<32x32xf32>
    %cst = arith.constant dense<0.000000e+00> : vector<8x32xf32>
    %2 = tpu.matmul %0, %1, %cst {dimension_numbers = #tpu.dot_dimension_numbers<[1], [0], [0], [1], [0, 0, 1, 1], [], []>} : vector<8x32xf32>, vector<32x32xf32>, vector<8x32xf32> -> vector<8x32xf32>
    %c0_3 = arith.constant 0 : index
    %c0_4 = arith.constant 0 : index
    %3 = vector.load %arg2[%c0_3, %c0_4] : memref<8x32xf32, #tpu.memory_space<vmem>>, vector<8x32xf32>
    %c0_5 = arith.constant 0 : index
    %c0_6 = arith.constant 0 : index
    %4 = vector.load %arg4[%c0_5, %c0_6] : memref<32x32xf32, #tpu.memory_space<vmem>>, vector<32x32xf32>
    %cst_7 = arith.constant dense<0.000000e+00> : vector<8x32xf32>
    %5 = tpu.matmul %3, %4, %cst_7 {dimension_numbers = #tpu.dot_dimension_numbers<[1], [0], [0], [1], [0, 0, 1, 1], [], []>} : vector<8x32xf32>, vector<32x32xf32>, vector<8x32xf32> -> vector<8x32xf32>
    %6 = arith.addf %2, %5 : vector<8x32xf32>
    %c0_8 = arith.constant 0 : index
    %c0_9 = arith.constant 0 : index
    %7 = vector.load %arg7[%c0_8, %c0_9] : memref<1x32xf32, #tpu.memory_space<vmem>>, vector<1x32xf32>
    %8 = vector.broadcast %7 : vector<1x32xf32> to vector<8x32xf32>
    %9 = arith.addf %6, %8 : vector<8x32xf32>
    %cst_10 = arith.constant 0.000000e+00 : f32
    %10 = vector.broadcast %cst_10 : f32 to vector<8x32xf32>
    %11 = arith.minimumf %9, %10 : vector<8x32xf32>
    %cst_11 = arith.constant 0.00138888892 : f32
    %12 = vector.broadcast %cst_11 : f32 to vector<8x32xf32>
    %13 = arith.mulf %11, %12 : vector<8x32xf32>
    %cst_12 = arith.constant 0.00833333377 : f32
    %14 = vector.broadcast %cst_12 : f32 to vector<8x32xf32>
    %15 = arith.addf %14, %13 : vector<8x32xf32>
    %16 = arith.mulf %11, %15 : vector<8x32xf32>
    %cst_13 = arith.constant 0.0416666679 : f32
    %17 = vector.broadcast %cst_13 : f32 to vector<8x32xf32>
    %18 = arith.addf %17, %16 : vector<8x32xf32>
    %19 = arith.mulf %11, %18 : vector<8x32xf32>
    %cst_14 = arith.constant 0.166666672 : f32
    %20 = vector.broadcast %cst_14 : f32 to vector<8x32xf32>
    %21 = arith.addf %20, %19 : vector<8x32xf32>
    %22 = arith.mulf %11, %21 : vector<8x32xf32>
    %cst_15 = arith.constant 5.000000e-01 : f32
    %23 = vector.broadcast %cst_15 : f32 to vector<8x32xf32>
    %24 = arith.addf %23, %22 : vector<8x32xf32>
    %25 = arith.mulf %11, %24 : vector<8x32xf32>
    %cst_16 = arith.constant 1.000000e+00 : f32
    %26 = vector.broadcast %cst_16 : f32 to vector<8x32xf32>
    %27 = arith.addf %26, %25 : vector<8x32xf32>
    %28 = arith.mulf %11, %27 : vector<8x32xf32>
    %cst_17 = arith.constant -5.000000e-01 : f32
    %29 = vector.broadcast %cst_17 : f32 to vector<8x32xf32>
    %30 = arith.cmpf ogt, %11, %29 : vector<8x32xf32>
    %31 = math.exp %11 : vector<8x32xf32>
    %cst_18 = arith.constant 1.000000e+00 : f32
    %32 = vector.broadcast %cst_18 : f32 to vector<8x32xf32>
    %33 = arith.subf %31, %32 : vector<8x32xf32>
    %34 = arith.select %30, %28, %33 : vector<8x32xi1>, vector<8x32xf32>
    %cst_19 = arith.constant 0.000000e+00 : f32
    %35 = vector.broadcast %cst_19 : f32 to vector<8x32xf32>
    %36 = arith.cmpf ogt, %9, %35 : vector<8x32xf32>
    %37 = arith.select %36, %9, %34 : vector<8x32xi1>, vector<8x32xf32>
    %c0_20 = arith.constant 0 : index
    %c0_21 = arith.constant 0 : index
    %38 = vector.load %arg5[%c0_20, %c0_21] : memref<32x32xf32, #tpu.memory_space<vmem>>, vector<32x32xf32>
    %cst_22 = arith.constant dense<0.000000e+00> : vector<8x32xf32>
    %39 = tpu.matmul %37, %38, %cst_22 {dimension_numbers = #tpu.dot_dimension_numbers<[1], [0], [0], [1], [0, 0, 1, 1], [], []>} : vector<8x32xf32>, vector<32x32xf32>, vector<8x32xf32> -> vector<8x32xf32>
    %c0_23 = arith.constant 0 : index
    %c0_24 = arith.constant 0 : index
    %40 = vector.load %arg8[%c0_23, %c0_24] : memref<1x32xf32, #tpu.memory_space<vmem>>, vector<1x32xf32>
    %41 = vector.broadcast %40 : vector<1x32xf32> to vector<8x32xf32>
    %42 = arith.addf %39, %41 : vector<8x32xf32>
    %43 = arith.negf %42 : vector<8x32xf32>
    %44 = math.exp %43 : vector<8x32xf32>
    %cst_25 = arith.constant 1.000000e+00 : f32
    %45 = vector.broadcast %cst_25 : f32 to vector<8x32xf32>
    %46 = arith.addf %45, %44 : vector<8x32xf32>
    %47 = arith.divf %45, %46 : vector<8x32xf32>
    %c0_26 = arith.constant 0 : index
    %c0_27 = arith.constant 0 : index
    %48 = vector.load %arg6[%c0_26, %c0_27] : memref<32x32xf32, #tpu.memory_space<vmem>>, vector<32x32xf32>
    %cst_28 = arith.constant dense<0.000000e+00> : vector<8x32xf32>
    %49 = tpu.matmul %37, %48, %cst_28 {dimension_numbers = #tpu.dot_dimension_numbers<[1], [0], [0], [1], [0, 0, 1, 1], [], []>} : vector<8x32xf32>, vector<32x32xf32>, vector<8x32xf32> -> vector<8x32xf32>
    %c0_29 = arith.constant 0 : index
    %c0_30 = arith.constant 0 : index
    %50 = vector.load %arg9[%c0_29, %c0_30] : memref<1x32xf32, #tpu.memory_space<vmem>>, vector<1x32xf32>
    %51 = vector.broadcast %50 : vector<1x32xf32> to vector<8x32xf32>
    %52 = arith.addf %49, %51 : vector<8x32xf32>
    %53 = arith.mulf %47, %52 : vector<8x32xf32>
    %54 = arith.addf %0, %53 : vector<8x32xf32>
    %cst_31 = arith.constant dense<0.000000e+00> : vector<8xf32>
    %55 = vector.multi_reduction <add>, %54, %cst_31 [1] : vector<8x32xf32> to vector<8xf32>
    %56 = vector.shape_cast %55 : vector<8xf32> to vector<8x1xf32>
    %cst_32 = arith.constant 3.200000e+01 : f32
    %57 = vector.broadcast %cst_32 : f32 to vector<8x1xf32>
    %58 = arith.divf %56, %57 : vector<8x1xf32>
    %59 = vector.broadcast %58 : vector<8x1xf32> to vector<8x32xf32>
    %60 = arith.subf %54, %59 : vector<8x32xf32>
    %61 = arith.mulf %60, %60 : vector<8x32xf32>
    %cst_33 = arith.constant dense<0.000000e+00> : vector<8xf32>
    %62 = vector.multi_reduction <add>, %61, %cst_33 [1] : vector<8x32xf32> to vector<8xf32>
    %63 = vector.shape_cast %62 : vector<8xf32> to vector<8x1xf32>
    %cst_34 = arith.constant 3.200000e+01 : f32
    %64 = vector.broadcast %cst_34 : f32 to vector<8x1xf32>
    %65 = arith.divf %63, %64 : vector<8x1xf32>
    %cst_35 = arith.constant 9.99999974E-6 : f32
    %66 = vector.broadcast %cst_35 : f32 to vector<8x1xf32>
    %67 = arith.addf %65, %66 : vector<8x1xf32>
    %68 = math.rsqrt %67 : vector<8x1xf32>
    %69 = vector.broadcast %68 : vector<8x1xf32> to vector<8x32xf32>
    %70 = arith.mulf %60, %69 : vector<8x32xf32>
    %c0_36 = arith.constant 0 : index
    %c0_37 = arith.constant 0 : index
    %71 = vector.load %arg10[%c0_36, %c0_37] : memref<1x32xf32, #tpu.memory_space<vmem>>, vector<1x32xf32>
    %72 = vector.broadcast %71 : vector<1x32xf32> to vector<8x32xf32>
    %73 = arith.mulf %70, %72 : vector<8x32xf32>
    %c0_38 = arith.constant 0 : index
    %c0_39 = arith.constant 0 : index
    %74 = vector.load %arg11[%c0_38, %c0_39] : memref<1x32xf32, #tpu.memory_space<vmem>>, vector<1x32xf32>
    %75 = vector.broadcast %74 : vector<1x32xf32> to vector<8x32xf32>
    %76 = arith.addf %73, %75 : vector<8x32xf32>
    %c0_40 = arith.constant 0 : index
    %c0_41 = arith.constant 0 : index
    %77 = vector.load %arg12[%c0_40, %c0_41] : memref<8x32xf32, #tpu.memory_space<vmem>>, vector<8x32xf32>
    tpu.vector_store %arg12[%c0_40, %c0_41], %76 {strides = array<i32>} : memref<8x32xf32, #tpu.memory_space<vmem>>, vector<8x32xf32>,
    return
  }
  func.func @transform_0(%arg0: i32) -> (i32, i32) {
    %c0_i32 = arith.constant 0 : i32
    %c0_i32_0 = arith.constant 0 : i32
    return %arg0, %c0_i32 : i32, i32
  }
  func.func @transform_1(%arg0: i32) -> (i32, i32) {
    %c0_i32 = arith.constant 0 : i32
    %c0_i32_0 = arith.constant 0 : i32
    return %arg0, %c0_i32 : i32, i32
  }
  func.func @transform_2(%arg0: i32) -> (i32, i32) {
    %c0_i32 = arith.constant 0 : i32
    %c0_i32_0 = arith.constant 0 : i32
    %c0_i32_1 = arith.constant 0 : i32
    return %c0_i32, %c0_i32_0 : i32, i32
  }
  func.func @transform_3(%arg0: i32) -> (i32, i32) {
    %c0_i32 = arith.constant 0 : i32
    %c0_i32_0 = arith.constant 0 : i32
    %c0_i32_1 = arith.constant 0 : i32
    return %c0_i32, %c0_i32_0 : i32, i32
  }
  func.func @transform_4(%arg0: i32) -> (i32, i32) {
    %c0_i32 = arith.constant 0 : i32
    %c0_i32_0 = arith.constant 0 : i32
    %c0_i32_1 = arith.constant 0 : i32
    return %c0_i32, %c0_i32_0 : i32, i32
  }
  func.func @transform_5(%arg0: i32) -> (i32, i32) {
    %c0_i32 = arith.constant 0 : i32
    %c0_i32_0 = arith.constant 0 : i32
    %c0_i32_1 = arith.constant 0 : i32
    return %c0_i32, %c0_i32_0 : i32, i32
  }
  func.func @transform_6(%arg0: i32) -> (i32, i32) {
    %c0_i32 = arith.constant 0 : i32
    %c0_i32_0 = arith.constant 0 : i32
    %c0_i32_1 = arith.constant 0 : i32
    return %c0_i32, %c0_i32_0 : i32, i32
  }
  func.func @transform_7(%arg0: i32) -> (i32, i32) {
    %c0_i32 = arith.constant 0 : i32
    %c0_i32_0 = arith.constant 0 : i32
    %c0_i32_1 = arith.constant 0 : i32
    return %c0_i32, %c0_i32_0 : i32, i32
  }
  func.func @transform_8(%arg0: i32) -> (i32, i32) {
    %c0_i32 = arith.constant 0 : i32
    %c0_i32_0 = arith.constant 0 : i32
    %c0_i32_1 = arith.constant 0 : i32
    return %c0_i32, %c0_i32_0 : i32, i32
  }
  func.func @transform_9(%arg0: i32) -> (i32, i32) {
    %c0_i32 = arith.constant 0 : i32
    %c0_i32_0 = arith.constant 0 : i32
    %c0_i32_1 = arith.constant 0 : i32
    return %c0_i32, %c0_i32_0 : i32, i32
  }
  func.func @transform_10(%arg0: i32) -> (i32, i32) {
    %c0_i32 = arith.constant 0 : i32
    %c0_i32_0 = arith.constant 0 : i32
    %c0_i32_1 = arith.constant 0 : i32
    return %c0_i32, %c0_i32_0 : i32, i32
  }
  func.func @transform_11(%arg0: i32) -> (i32, i32) {
    %c0_i32 = arith.constant 0 : i32
    %c0_i32_0 = arith.constant 0 : i32
    return %arg0, %c0_i32 : i32, i32
  }
}

</mosaic_0001>

<bundles_post_ra>
// kernel: grn_apply.1
= control target key start
LH: loop header
LB: loop body
LE: loop exit
PB: predicated region body
PF: predicated region fallthrough
CT: control target
= control target key end

     0   :  { %s1863_s0 = inlined_call_operand.hbm [shape: f32[16,32], index: 0, kind: input, shape index: {}]   ;;  %s1864_s1 = inlined_call_operand.hbm [shape: f32[16,32], index: 1, kind: input, shape index: {}]   ;;  %s1865_s2 = inlined_call_operand.vmem [shape: f32[32,32], index: 2, kind: input, shape index: {}]   ;;  %s1866_s3 = inlined_call_operand.hbm [shape: f32[32,32], index: 3, kind: input, shape index: {}]   ;;  %s1867_s4 = inlined_call_operand.hbm [shape: f32[32,32], index: 4, kind: input, shape index: {}]   ;;  %s1868_s5 = inlined_call_operand.hbm [shape: f32[32,32], index: 5, kind: input, shape index: {}]   ;;  %s1869_s6 = inlined_call_operand.vmem [shape: f32[1,32], index: 6, kind: input, shape index: {}]   ;;  %s1870_s7 = inlined_call_operand.vmem [shape: f32[1,32], index: 7, kind: input, shape index: {}]   ;;  %s1871_s8 = inlined_call_operand.vmem [shape: f32[1,32], index: 8, kind: input, shape index: {}]   ;;  %s1872_s9 = inlined_call_operand.vmem [shape: f32[1,32], index: 9, kind: input, shape index: {}]   ;;  %s1873_s10 = inlined_call_operand.vmem [shape: f32[1,32], index: 10, kind: input, shape index: {}]   ;;  %s1874_s11 = inlined_call_operand.hbm [shape: f32[16,32], index: 11, kind: output, shape index: {}]  }
   0x1   :  { %1882 = sst [smem:[#allocation19_spill]] %s1866_s3 }
   0x2   :  { %1883 = sst [smem:[#allocation20_spill]] %s1867_s4 }
   0x3   :  { %1884 = sst [smem:[#allocation21_spill]] %s1868_s5 }
   0x4   :  { %1885 = sst [smem:[#allocation22_spill]] %s1872_s9 }
   0x5   :  { %1886 = sst [smem:[#allocation23_spill]] %s1873_s10 }
   0x6   :  { %1887 = sst [smem:[#allocation24_spill]] %s1874_s11 }
   0x7   :  { %16 = vsyncpa [#allocation3], 0 }
   0x8   :  { %18 = vsyncpa [#allocation3 + $0x1], 0 }
   0x9   :  { %19 = vsyncpa [#allocation6], 0 }
   0xa   :  { %21 = vsyncpa [#allocation6 + $0x1], 0 }
   0xb   :  { %22 = vsyncpa [#allocation9], 0 }
   0xc   :  { %23 = vsyncpa [#allocation4], 0 }
   0xd   :  { %25 = vsyncpa [#allocation4 + $0x1], 0  ;;  %s1515_s17 = smov 0   ;;  %s1517_s18 = smov 0  }
   0xe   :  { %s1519_s19 = smov 0   ;;  %s1521_s20 = smov 0  }
   0xf LB: > { %1888 = sst [smem:[#allocation17_spill]] %s1430_s17  ;;  %s1536_s21 = sadd.s32 4294967295, %s1442_s20   ;;  %s1442_s20 = sphi %s1521_s20, %s1918_s20   ;;  %s1438_s19 = sphi %s1519_s19, %s1917_s19   ;;  %s1434_s18 = sphi %s1517_s18, %s1916_s18   ;;  %s1430_s17 = sphi %s1515_s17, %s1915_s17  }
  0x10   : > { %s1005_s22 = sadd.s32 4294967294, %s1442_s20   ;;  %p51_p0 = scmp.ne.s32.totalorder %s1434_s18, %s1430_s17 }
  0x11   : > { %p1876_p1 = scmp.eq.s32.totalorder %s1536_s21, 0  ;;  %p296_p3 = scmp.eq.s32.totalorder %s1005_s22, 1 }
  0x12   : > { %p1006_p5 = scmp.ge.s32.totalorder %s1442_s20, 1  ;;  %p303_p7 = scmp.lt.s32.totalorder %s1442_s20, 3 }
  0x13   : > { %p1545_p4 = por %p1876_p1, %p51_p0  ;;  %p1550_p6 = por %p296_p3, %p51_p0 }
  0x14   : > { %p1555_p8 = pnand %p1006_p5, %p303_p7  ;;  %s1444_s26 = smov [#allocation7]  }
  0x15   : > { %s1889_s23 = scalar_select %p1545_p4, 1, 0 }
  0x16   : > { %s1890_s24 = scalar_select %p1550_p6, 1, 0 }
  0x17   : > { %s1892_s25 = scalar_select %p1555_p8, 1, 0 }
  0x18   : > { %1891 = sst [smem:[#allocation18_spill]] %s1890_s24  ;;  %s318_s27 = sshll.u32 %s1444_s26, 4  ;;  %s1559_s27 = int_to_ptr.vmem [resolvable:$true] %s318_s27 }
  0x19   : > { %p1143_p9 = pneg %p1555_p8  ;;  %s1445_s29 = smov [#allocation8]  }
  0x1a   : > { %s331_s30 = sshll.u32 %s1445_s29, 4  ;;  %s1446_s12 = smov [#allocation10]   ;;  %s1570_s30 = int_to_ptr.vmem [resolvable:$true] %s331_s30 }
  0x1b   : > { %p1566_p11 = pnand %p1143_p9, %p1876_p1  ;;  %s1572_s13 = sshll.u32 %s1446_s12, 4  ;;  %s345_s13 = int_to_ptr.vmem [resolvable:$true] %s1572_s13 }
  0x1c   : > { %s1894_s3 = sld [smem:[#allocation19_spill]] }
  0x1d   : > { %p1582_p13 = pneg %p1566_p11 }
  0x22   : > { %s1220_s16 = scalar_lea.hbm %s1894_s3, 512 }
  0x23   : > { %p1221_p12 = scmp.ne.s32.totalorder %s1894_s3, %s1220_s16  ;;  %p1227_p5 = scmp.lt.u32.totalorder %s1220_s16, %s1894_s3 }
  0x25   : > { %p1223_p0 = pnand %p1582_p13, %p1221_p12 }
  0x27   : > { %p1224_p3 = pneg %p1223_p0 }
  0x29   : > { %p1229_p7 = pnand %p1227_p5, %p1224_p3 }
  0x2b   : > { %1232 = shalt.err (!%p1229_p7)
}
  0x2c   : > { %s1233_s14 = scalar_lea.vmem %s1559_s27, 512  ;;  %p1241_p2 = scmp.lt.s32.totalorder %s1559_s27, %s1559_s27 }
  0x2d   : > { %p1234_p9 = scmp.ne.s32.totalorder %s1559_s27, %s1233_s14  ;;  %p1242_p6 = scmp.lt.s32.totalorder %s1233_s14, %s1233_s14 }
  0x2f   : > { %p1236_p10 = pnand %p1234_p9, %p1582_p13  ;;  %p1243_p12 = por %p1242_p6, %p1241_p2 }
  0x31   : > { %p1237_p1 = pneg %p1236_p10 }
  0x33   : > { %p1244_p0 = pnand %p1243_p12, %p1237_p1 }
  0x35   : > { %1247 = shalt.err (!%p1244_p0)
}
  0x36   : > { %s1447_s15 = smov 128   ;;  %s1448_s16 = smov 8  }
  0x37   : > { %1146 = dma.hbm_to_vmem [thread:$0]  (!%p1566_p11), %s1894_s3, 512, %s1559_s27, [#allocation6], %s1447_s15, %s1447_s15, %s1448_s16  }
  0x38   : > { %s1896_s4 = sld [smem:[#allocation20_spill]] }
  0x3e   : > { %s1248_s14 = scalar_lea.hbm %s1896_s4, 512 }
  0x3f   : > { %p1249_p1 = scmp.ne.s32.totalorder %s1896_s4, %s1248_s14  ;;  %p1255_p10 = scmp.lt.u32.totalorder %s1248_s14, %s1896_s4 }
  0x41   : > { %p1251_p2 = pnand %p1249_p1, %p1582_p13 }
  0x43   : > { %p1252_p6 = pneg %p1251_p2 }
  0x45   : > { %p1257_p3 = pnand %p1255_p10, %p1252_p6 }
  0x47   : > { %1260 = shalt.err (!%p1257_p3)
}
  0x48   : > { %s1261_s27 = scalar_lea.vmem %s1570_s30, 512  ;;  %p1269_p12 = scmp.lt.s32.totalorder %s1570_s30, %s1570_s30 }
  0x49   : > { %p1262_p5 = scmp.ne.s32.totalorder %s1570_s30, %s1261_s27  ;;  %p1270_p0 = scmp.lt.s32.totalorder %s1261_s27, %s1261_s27 }
  0x4b   : > { %p1264_p7 = pnand %p1262_p5, %p1582_p13  ;;  %p1271_p1 = por %p1270_p0, %p1269_p12 }
  0x4d   : > { %p1265_p9 = pneg %p1264_p7 }
  0x4f   : > { %p1272_p2 = pnand %p1271_p1, %p1265_p9 }
  0x51   : > { %1275 = shalt.err (!%p1272_p2)
}
  0x52   : > { %1149 = dma.hbm_to_vmem [thread:$0]  (!%p1566_p11), %s1896_s4, 512, %s1570_s30, [#allocation9], %s1447_s15, %s1447_s15, %s1448_s16  }
  0x53   : > { %s1897_s5 = sld [smem:[#allocation21_spill]] }
  0x59   : > { %s1276_s22 = scalar_lea.hbm %s1897_s5, 512 }
  0x5a   : > { %p1277_p6 = scmp.ne.s32.totalorder %s1897_s5, %s1276_s22  ;;  %p1283_p5 = scmp.lt.u32.totalorder %s1276_s22, %s1897_s5 }
  0x5c   : > { %p1279_p10 = pnand %p1277_p6, %p1582_p13 }
  0x5e   : > { %p1280_p3 = pneg %p1279_p10 }
  0x60   : > { %p1285_p7 = pnand %p1283_p5, %p1280_p3 }
  0x62   : > { %1288 = shalt.err (!%p1285_p7)
}
  0x63   : > { %s1289_s27 = scalar_lea.vmem %s345_s13, 512  ;;  %p1297_p1 = scmp.lt.s32.totalorder %s345_s13, %s345_s13 }
  0x64   : > { %p1290_p9 = scmp.ne.s32.totalorder %s345_s13, %s1289_s27  ;;  %p1298_p2 = scmp.lt.s32.totalorder %s1289_s27, %s1289_s27 }
  0x66   : > { %p1292_p12 = pnand %p1290_p9, %p1582_p13  ;;  %p1299_p4 = por %p1298_p2, %p1297_p1 }
  0x68   : > { %p1293_p0 = pneg %p1292_p12 }
  0x6a   : > { %p1300_p8 = pnand %p1299_p4, %p1293_p0 }
  0x6c   : > { %1303 = shalt.err (!%p1300_p8)
}
  0x6d   : > { %1152 = dma.hbm_to_vmem [thread:$0]  (!%p1566_p11), %s1897_s5, 512, %s345_s13, [#allocation9], %s1447_s15, %s1447_s15, %s1448_s16  }
  0x6e   : > { %s1655_s24 = sadd.s32 1, %s1442_s20   ;;  %s38_s10 = sadd.s32 1, %s1438_s19 }
  0x6f   : > { %s35_s28 = ssub.s32 %s1442_s20, %s1655_s24  ;;  %p45_p8 = scmp.ne.s32.totalorder %s1438_s19, %s1434_s18 }
  0x70   : > { %p36_p4 = scmp.eq.s32.totalorder %s35_s28, 0  ;;  %p46_p13 = scmp.eq.s32.totalorder %s1442_s20, 0 }
  0x71   : > { %p1167_p6 = scmp.lt.s32.totalorder %s1442_s20, 2  ;;  %p1898_p3 = scmp.eq.s32.totalorder %s1536_s21, 1 }
  0x72   : > { %s1665_s11 = scalar_select %p36_p4, %s1438_s19, %s38_s10  }
  0x73   : > { %p47_p10 = por %p46_p13, %p45_p8  ;;  %p1669_p5 = por %p1898_p3, %p45_p8 }
  0x74   : > { %s373_s22 = sand.u32 1, %s1438_s19   ;;  %s1012_s26 = sshll.u32 %s1442_s20, 7 }
  0x75   : > { %s1899_s17 = scalar_select %p1669_p5, 1, 0 }
  0x76   : > { %s1675_s13 = sshll.u32 %s373_s22, 3  ;;  %s1680_s29 = scalar_lea.hbm %s1863_s0, %s1012_s26 }
  0x77   : > { %s377_s12 = scalar_lea.vmem [#allocation2], %s1675_s13  ;;  %p1683_p11 = pnand %p1167_p6, %p47_p10 }
  0x78   : > { %s384_s14 = sshll.u32 %s377_s12, 4  ;;  %s1692_s28 = scalar_lea.hbm %s1864_s1, %s1012_s26  ;;  %s1687_s14 = int_to_ptr.vmem [resolvable:$true] %s384_s14 }
  0x79   : > { %s374_s10 = scalar_lea.sflag [#allocation3], %s373_s22  ;;  %s1304_s15 = scalar_lea.hbm %s1680_s29, 128 }
  0x7a   : > { %p1305_p7 = scmp.ne.s32.totalorder %s1680_s29, %s1304_s15  ;;  %p1306_p9 = pneg %p1683_p11 }
  0x7b   : > { %s1309_s3 = scalar_lea.hbm %s1863_s0, 256  ;;  %p1310_p1 = scmp.lt.u32.totalorder %s1680_s29, %s1863_s0 }
  0x7c   : > { %p1307_p12 = pnand %p1306_p9, %p1305_p7  ;;  %p1311_p2 = scmp.lt.u32.totalorder %s1309_s3, %s1304_s15 }
  0x7d   : > { %p1313_p8 = scmp.lt.u32.totalorder %s1304_s15, %s1680_s29 }
  0x7e   : > { %p1308_p0 = pneg %p1307_p12  ;;  %p1312_p4 = por %p1311_p2, %p1310_p1 }
  0x80   : > { %p1314_p13 = por %p1313_p8, %p1312_p4 }
  0x82   : > { %p1315_p6 = pnand %p1314_p13, %p1308_p0 }
  0x84   : > { %1318 = shalt.err (!%p1315_p6)
}
  0x85   : > { %s1319_s22 = scalar_lea.vmem %s1687_s14, 128  ;;  %s1449_s26 = smov [#allocation2]  }
  0x86   : > { %p1320_p10 = scmp.ne.s32.totalorder %s1687_s14, %s1319_s22  ;;  %s1324_s30 = sshll.u32 %s1449_s26, 4  ;;  %s1325_s30 = int_to_ptr.vmem [resolvable:$false] %s1324_s30 }
  0x87   : > { %s1326_s4 = scalar_lea.vmem %s1325_s30, 256  ;;  %p1327_p12 = scmp.lt.s32.totalorder %s1687_s14, %s1325_s30 }
  0x88   : > { %p1322_p3 = pnand %p1320_p10, %p1306_p9  ;;  %p1328_p1 = scmp.lt.s32.totalorder %s1326_s4, %s1319_s22 }
  0x8a   : > { %p1323_p7 = pneg %p1322_p3  ;;  %p1329_p2 = por %p1328_p1, %p1327_p12 }
  0x8c   : > { %p1330_p4 = pnand %p1329_p2, %p1323_p7 }
  0x8e   : > { %1333 = shalt.err (!%p1330_p4)
}
  0x8f   : > { %1156 = dma.hbm_to_vmem [thread:$0]  (!%p1683_p11), %s1680_s29, 128, %s1687_s14, %s374_s10  }
  0x90   : > { %s391_s3 = sand.u32 1, %s1442_s20   ;;  %s395_s5 = scalar_lea.vmem [#allocation5], %s1675_s13 }
  0x91   : > { %s402_s9 = sshll.u32 %s395_s5, 4  ;;  %s392_s15 = scalar_lea.sflag [#allocation6], %s391_s3  ;;  %s403_s9 = int_to_ptr.vmem [resolvable:$true] %s402_s9 }
  0x92   : > { %s1334_s16 = scalar_lea.hbm %s1692_s28, 128  ;;  %s1339_s26 = scalar_lea.hbm %s1864_s1, 256 }
  0x93   : > { %p1335_p0 = scmp.ne.s32.totalorder %s1692_s28, %s1334_s16  ;;  %p1340_p6 = scmp.lt.u32.totalorder %s1692_s28, %s1864_s1 }
  0x94   : > { %p1341_p10 = scmp.lt.u32.totalorder %s1339_s26, %s1334_s16  ;;  %p1343_p7 = scmp.lt.u32.totalorder %s1334_s16, %s1692_s28 }
  0x95   : > { %p1337_p8 = pnand %p1335_p0, %p1306_p9 }
  0x96   : > { %p1342_p3 = por %p1341_p10, %p1340_p6 }
  0x97   : > { %p1338_p13 = pneg %p1337_p8 }
  0x98   : > { %p1344_p12 = por %p1343_p7, %p1342_p3 }
  0x9a   : > { %p1345_p1 = pnand %p1344_p12, %p1338_p13 }
  0x9c   : > { %1348 = shalt.err (!%p1345_p1)
}
  0x9d   : > { %s1349_s13 = scalar_lea.vmem %s403_s9, 128  ;;  %s1450_s29 = smov [#allocation5]  }
  0x9e   : > { %p1350_p2 = scmp.ne.s32.totalorder %s403_s9, %s1349_s13  ;;  %s1354_s14 = sshll.u32 %s1450_s29, 4  ;;  %s1355_s14 = int_to_ptr.vmem [resolvable:$false] %s1354_s14 }
  0x9f   : > { %s1356_s10 = scalar_lea.vmem %s1355_s14, 256  ;;  %p1357_p8 = scmp.lt.s32.totalorder %s403_s9, %s1355_s14 }
  0xa0   : > { %p1352_p4 = pnand %p1350_p2, %p1306_p9  ;;  %p1358_p5 = scmp.lt.s32.totalorder %s1356_s10, %s1349_s13 }
  0xa2   : > { %p1353_p0 = pneg %p1352_p4  ;;  %p1359_p6 = por %p1358_p5, %p1357_p8 }
  0xa4   : > { %p1360_p10 = pnand %p1359_p6, %p1353_p0 }
  0xa6   : > { %1363 = shalt.err (!%p1360_p10)
}
  0xa7   : > { %1159 = dma.hbm_to_vmem [thread:$0]  (!%p1683_p11), %s1692_s28, 128, %s403_s9, %s392_s15  }
  0xa8   : > { %p1901_p13 = scmp.ne.s32.totalorder %s1892_s25, 0 }
  0xa9   : > { %s1743_s3 = sand.u32 (!%p1901_p13), 1, %s1434_s18   ;;  %p1902_p5 = scmp.ne.s32.totalorder (!%p1901_p13), %s1889_s23, 0 }
  0xaa   : > { %411 = sbr.rel (%p1901_p13) target bundleno = 1012 (0x3f4), region = 64  ;;  %s1746_s5 = sshll.u32 (!%p1901_p13), %s1743_s3, 3 }
  0xab   : > { %s414_s16 = scalar_lea.sflag (!%p1901_p13), [#allocation3], %s1743_s3  ;;  %s417_s12 = scalar_lea.vmem (!%p1901_p13), [#allocation2], %s1746_s5 }
  0xb1   : > { %1409 = dma.done.wait (%p1902_p5), %s414_s16, 128  }
  0xb2   : > { %1411 = vsyncadd (%p1902_p5), %s414_s16, 4294967168  ;;  %s422_s25 = sand.u32 1, %s1536_s21   ;;  %s426_s28 = scalar_lea.vmem [#allocation5], %s1746_s5 }
  0xb3   : > { %s423_s27 = scalar_lea.sflag [#allocation6], %s422_s25 }
  0xb4   : > { %1413 = dma.done.wait (%p1902_p5), %s423_s27, 128  }
  0xb5   : > { %1415 = vsyncadd (%p1902_p5), %s423_s27, 4294967168  ;;  %p1903_p11 = scmp.eq.s32.totalorder %s1536_s21, 0 }
  0xb7   : > { %1417 = dma.done.wait (%p1903_p11), [#allocation6], 512   ;;  %p1904_p9 = pmov %p1903_p11 }
  0xb9   : > { %1419 = vsyncadd (%p1904_p9), [#allocation6], 4294966784  ;;  %p1905_p3 = pmov %p1904_p9 }
  0xbb   : > { %1421 = dma.done.wait (%p1905_p3), [#allocation9], 1024   ;;  %p1906_p7 = pmov %p1905_p3 }
  0xbc   : > { %v1451_v0 = vmov 0.0|0.0   ;;  %vm1452_vm0 = vmmov 0   ;;  %v1453_v1 = vmov 0.0   ;;  %v488_v2 = vld [vmem:[#allocation7] sm:$0xff]  ;;  %v489_v3 = vld [vmem:[#allocation7 + $0x8] sm:$0xff]  ;;  %v490_v7 = vld [vmem:[#allocation7 + $0x10] sm:$0xff] }
  0xbd   : > { %1423 = vsyncadd (%p1906_p7), [#allocation9], 4294966272  ;;  %1101 = vmatprep.subr.bf16.mxu0 %v1451_v0  ;;  %1107 = vmatprep.subr.bf16.mxu1 %v1451_v0  ;;  %v483_v4 = vld [vmem:[%s1865_s2] sm:$0xff]  ;;  %v1102_v5 = vpack.c.bf16 %v489_v3, %v488_v2  ;;  %v484_v6 = vld [vmem:[%s1865_s2 + $0x8] sm:$0xff]  ;;  %vm492_vm1 = vcmask 261120   ;;  %s1907_s23 = sld [smem:[#allocation22_spill]] }
  0xbe   : > { %1065 = vmatprep.mubr.msk.f32.mxu0 %vm1452_vm0, %v1453_v1  ;;  %1076 = vmatprep.mubr.msk.f32.mxu1 %vm1452_vm0, %v1453_v1  ;;  %v491_v8 = vld [vmem:[#allocation7 + $0x18] sm:$0xff]  ;;  %v1108_v9 = vpack.c.bf16 %v484_v6, %v483_v4  ;;  %v485_v10 = vld [vmem:[%s1865_s2 + $0x10] sm:$0xff]  ;;  %v1786_v15 = vld [vmem:[%s417_s12] sm:$0xff]  ;;  %s1908_s22 = sld [smem:[#allocation23_spill]]  ;;  %s1034_s26 = sshll.u32 %s1536_s21, 7 }
  0xbf   : > { %v486_v11 = vld [vmem:[%s1865_s2 + $0x18] sm:$0xff]  ;;  %1103 = vmatpush3.bf16.msra.mxu0 %v1102_v5  ;;  %v1105_v12 = vpack.c.bf16 %v491_v8, %v490_v7  ;;  %v666_v16 = vld [vmem:[#allocation8] sm:$0xff]  ;;  %v667_v17 = vld [vmem:[#allocation8 + $0x8] sm:$0xff]  ;;  %s481_s30 = scalar_lea.vmem [#allocation11], %s1746_s5  ;;  %s1909_s14 = sld [smem:[#allocation24_spill]] }
  0xc0   : > { %1109 = vmatpush3.bf16.msra.mxu1 %v1108_v9  ;;  %1104 = vmatprep.subr.bf16.mxu0 %v1451_v0  ;;  %v1111_v13 = vpack.c.bf16 %v486_v11, %v485_v10  ;;  %v487_v14 = vld [vmem:[%s426_s28] sm:$0xff]  ;;  %v756_v18 = vld [vmem:[#allocation10] sm:$0xff]  ;;  %v1114_v19 = vpack.c.bf16 %v667_v17, %v666_v16  ;;  %v757_v20 = vld [vmem:[#allocation10 + $0x8] sm:$0xff]  ;;  %s884_s4 = sshll.u32 %s481_s30, 4  ;;  %s871_s16 = scalar_lea.sflag [#allocation4], %s1743_s3  ;;  %s1820_s4 = int_to_ptr.vmem [resolvable:$true] %s884_s4 }
  0xc1   : > { %1110 = vmatprep.subr.bf16.mxu1 %v1451_v0  ;;  %v668_v21 = vld [vmem:[#allocation8 + $0x10] sm:$0xff]  ;;  %v669_v22 = vld [vmem:[#allocation8 + $0x18] sm:$0xff]  ;;  %v1120_v23 = vpack.c.bf16 %v757_v20, %v756_v18  ;;  %v1024_v30 = vld [vmem:[%s1869_s6] ss:$0 sm:$0xff]  ;;  %s1364_s12 = scalar_lea.vmem %s1820_s4, 128  ;;  %p1910_p1 = scmp.ne.s32.totalorder %s1899_s17, 0 }
  0xc2   : > { %v758_v24 = vld [vmem:[#allocation10 + $0x10] sm:$0xff]  ;;  %v759_v25 = vld [vmem:[#allocation10 + $0x18] sm:$0xff]  ;;  %v1117_v26 = vpack.c.bf16 %v669_v22, %v668_v21  ;;  %v1026_v52 = vld [vmem:[%s1870_s7] ss:$0 sm:$0xff]  ;;  %p1365_p12 = scmp.ne.s32.totalorder %s1820_s4, %s1364_s12  ;;  %s1454_s21 = smov [#allocation11]  }
  0xc3   : > { %1106 = vmatpush3.bf16.msra.mxu0 %v1105_v12  ;;  %v1123_v27 = vpack.c.bf16 %v759_v25, %v758_v24  ;;  %v1029_v61 = vld [vmem:[%s1871_s8] ss:$0 sm:$0xff]  ;;  %s1368_s5 = sshll.u32 %s1454_s21, 4  ;;  %s1369_s5 = int_to_ptr.vmem [resolvable:$false] %s1368_s5 }
  0xc4   : > { %1112 = vmatpush3.bf16.msra.mxu1 %v1111_v13  ;;  %1113 = vmatprep.subr.bf16.mxu0 %v1451_v0  ;;  %v1031_v12 = vld [vmem:[%s1907_s23] ss:$0 sm:$0xff]  ;;  %p1366_p2 = pnand %p1365_p12, %p1910_p1  ;;  %s1370_s25 = scalar_lea.vmem %s1369_s5, 256 }
  0xc5   : > { %1119 = vmatprep.subr.bf16.mxu1 %v1451_v0  ;;  %s1818_s10 = scalar_lea.hbm %s1909_s14, %s1034_s26  ;;  %p1371_p0 = scmp.lt.s32.totalorder %s1820_s4, %s1369_s5 }
  0xc6   : > { %1066 = vmatmul.mubr.msk.f32.vlgmr.msra.gmra.mrb[0].mxu0 %vm492_vm1, %v487_v14  ;;  %v1032_v14 = vld [vmem:[%s1908_s22] ss:$0 sm:$0xff]  ;;  %p1367_p4 = pneg %p1366_p2  ;;  %p1372_p8 = scmp.lt.s32.totalorder %s1370_s25, %s1364_s12 }
  0xc7   : > { %1077 = vmatmul.mubr.msk.f32.vlgmr.msra.gmra.mrb[0].mxu1 %vm492_vm1, %v1786_v15  ;;  %1087 = vmatprep.mubr.msk.f32.mxu0 %vm1452_vm0, %v1453_v1 }
  0xc8   : > { %1098 = vmatprep.mubr.msk.f32.mxu1 %vm1452_vm0, %v1453_v1  ;;  %1115 = vmatpush3.bf16.msra.mxu0 %v1114_v19  ;;  %p1373_p6 = por %p1372_p8, %p1371_p0 }
  0xc9   : > { %1121 = vmatpush3.bf16.msra.mxu1 %v1120_v23  ;;  %1116 = vmatprep.subr.bf16.mxu0 %v1451_v0 }
  0xca   : > { %1122 = vmatprep.subr.bf16.mxu1 %v1451_v0  ;;  %p1374_p10 = pnand %p1373_p6, %p1367_p4 }
  0xcc   : > { %1118 = vmatpush3.bf16.msra.mxu0 %v1117_v26 }
  0xcd   : > { %1124 = vmatpush3.bf16.msra.mxu1 %v1123_v27 }
 0x199   : > { %v562_v28 = vpop.f32.mrb[0].mxu0 }
 0x19a   : > { %v635_v29 = vpop.f32.mrb[0].mxu1  ;;  %v1067_v31 = vpop.f32.mrb[1].mxu0 }
 0x19b   : > { %v636_v32 = vadd.f32 %v635_v29, %v562_v28  ;;  %v1078_v33 = vpop.f32.mrb[1].mxu1 }
 0x19d   : > { %v646_v34 = vadd.f32 %v1024_v30, %v636_v32 }
 0x19f   : > { %v647_v35 = vmin.f32 %v646_v34, 0.0  ;;  %vm664_vm3 = vcmp.gt.f32.partialorder %v646_v34, 0.0 }
 0x1a1   : > { %v648_v36 = vmul.f32 0.0013888889, %v647_v35  ;;  %v660_v38 = vmul.f32 1.442695, %v647_v35  ;;  %vm659_vm2 = vcmp.gt.f32.partialorder %v647_v35, -0.5 }
 0x1a3   : > { %v649_v37 = vadd.f32 0.008333334, %v648_v36  ;;  %1212 = vpow2.f32 %v660_v38 }
 0x1a5   : > { %v650_v39 = vmul.f32 %v649_v37, %v647_v35 }
 0x1a7   : > { %v651_v40 = vadd.f32 0.041666668, %v650_v39 }
 0x1a9   : > { %v652_v41 = vmul.f32 %v651_v40, %v647_v35 }
 0x1ab   : > { %v653_v42 = vadd.f32 0.16666667, %v652_v41 }
 0x1ad   : > { %v654_v43 = vmul.f32 %v653_v42, %v647_v35  ;;  %v1213_v46 = vpop.eup %1212 }
 0x1ae   : > { %v1025_v49 = vadd.f32 -1.0, %v1213_v46 }
 0x1af   : > { %v655_v44 = vadd.f32 0.5, %v654_v43 }
 0x1b1   : > { %v656_v45 = vmul.f32 %v655_v44, %v647_v35 }
 0x1b3   : > { %v657_v47 = vadd.f32 1.0, %v656_v45 }
 0x1b5   : > { %v658_v48 = vmul.f32 %v657_v47, %v647_v35 }
 0x1b7   : > { %v663_v50 = vsel %vm659_vm2, %v658_v48, %v1025_v49 }
 0x1b8   : > { %v665_v51 = vsel %vm664_vm3, %v646_v34, %v663_v50 }
 0x1b9   : > { %1088 = vmatmul.mubr.msk.f32.vlgmr.msra.gmra.mrb[2].mxu0 %vm492_vm1, %v665_v51  ;;  %1099 = vmatmul.mubr.msk.f32.vlgmr.msra.gmra.mrb[2].mxu1 %vm492_vm1, %v665_v51 }
 0x28c   : > { %v746_v53 = vpop.f32.mrb[2].mxu0  ;;  %v833_v54 = vpop.f32.mrb[2].mxu1 }
 0x28d   : > { %v747_v55 = vadd.f32 %v1026_v52, %v746_v53  ;;  %v1089_v56 = vpop.f32.mrb[3].mxu0  ;;  %v1100_v57 = vpop.f32.mrb[3].mxu1  ;;  %v834_v62 = vadd.f32 %v1029_v61, %v833_v54 }
 0x28f   : > { %v1028_v58 = vmul.f32 -1.442695, %v747_v55 }
 0x291   : > { %1214 = vpow2.f32 %v1028_v58 }
 0x29b   : > { %v1215_v59 = vpop.eup %1214 }
 0x29c   : > { %v753_v60 = vadd.f32 1.0, %v1215_v59 }
 0x29e   : > { %1216 = vrcp.f32 %v753_v60 }
 0x2a8   : > { %v1217_v63 = vpop.eup %1216 }
 0x2a9   : > { %v837_v0 = vmul.f32 %v1217_v63, %v834_v62 }
 0x2ab   : > { %v838_v1 = vadd.f32 %v837_v0, %v1786_v15 }
 0x2ad   : > { %v839_v2 = vsel %vm492_vm1, %v838_v1, 0.0 }
 0x2ae   : > { %840 = vadd.xlane.f32.xlu0 %v839_v2 }
 0x33b   : > { %v841_v3 = vpop.xlane.xlu0 %840 }
 0x33c   : > { %v843_v4 = vmul.f32 0.03125, %v841_v3 }
 0x33e   : > { %v844_v5 = vsub.f32 %v838_v1, %v843_v4 }
 0x340   : > { %v845_v6 = vmul.f32 %v844_v5, %v844_v5 }
 0x342   : > { %v846_v7 = vsel %vm492_vm1, %v845_v6, 0.0 }
 0x343   : > { %847 = vadd.xlane.f32.xlu0 %v846_v7 }
 0x3d0   : > { %v848_v8 = vpop.xlane.xlu0 %847 }
 0x3d1   : > { %v849_v9 = vmul.f32 0.03125, %v848_v8 }
 0x3d3   : > { %v850_v10 = vadd.f32 1e-05, %v849_v9 }
 0x3d5   : > { %1218 = vrsqrt.f32 %v850_v10 }
 0x3df   : > { %v1219_v11 = vpop.eup %1218 }
 0x3e0   : > { %v852_v13 = vmul.f32 %v1219_v11, %v844_v5 }
 0x3e2   : > { %v860_v15 = vmul.f32 %v1031_v12, %v852_v13 }
 0x3e4   : > { %v868_v16 = vadd.f32 %v1032_v14, %v860_v15 }
 0x3e6   : > { %869 = vst.msk [vmem:[%s481_s30] sm:$0xff] %vm492_vm1, %v868_v16 }
 0x3e7   : > { %1377 = shalt.err (!%p1374_p10)
}
 0x3e8   : > { %s1378_s3 = scalar_lea.hbm %s1818_s10, 128  ;;  %s1382_s23 = scalar_lea.hbm %s1909_s14, 256 }
 0x3e9   : > { %p1379_p13 = scmp.ne.s32.totalorder %s1818_s10, %s1378_s3  ;;  %p1383_p9 = scmp.lt.u32.totalorder %s1818_s10, %s1909_s14 }
 0x3ea   : > { %p1384_p3 = scmp.lt.u32.totalorder %s1382_s23, %s1378_s3  ;;  %p1386_p12 = scmp.lt.u32.totalorder %s1378_s3, %s1818_s10 }
 0x3eb   : > { %p1380_p5 = pnand %p1379_p13, %p1910_p1 }
 0x3ec   : > { %p1385_p7 = por %p1384_p3, %p1383_p9 }
 0x3ed   : > { %p1381_p11 = pneg %p1380_p5 }
 0x3ee   : > { %p1387_p2 = por %p1386_p12, %p1385_p7 }
 0x3f0   : > { %p1388_p4 = pnand %p1387_p2, %p1381_p11 }
 0x3f2   : > { %1391 = shalt.err (!%p1388_p4)
}
 0x3f3   : > { %1141 = dma.vmem_to_hbm [thread:$0]  (%p1910_p1), %s1820_s4, 128, %s1818_s10, %s871_s16  }
 0x3f4 PF: > { %s1911_s22 = sld [smem:[#allocation17_spill]]  ;;  %s1912_s26 = sld [smem:[#allocation18_spill]] }
 0x3f5   : > { %p1914_p8 = scmp.ge.s32.totalorder %s1442_s20, 2 }
 0x3fa   : > { %s896_s30 = sand.u32 1, %s1911_s22   ;;  %p1913_p0 = scmp.ne.s32.totalorder %s1912_s26, 0 }
 0x3fb   : > { %s897_s13 = scalar_lea.sflag [#allocation4], %s896_s30 }
 0x3fc   : > { %p1161_p6 = pnand %p1914_p8, %p1913_p0 }
 0x3fe   : > { %1425 = dma.done.wait (!%p1161_p6), %s897_s13, 128  }
 0x3ff   : > { %1427 = vsyncadd (!%p1161_p6), %s897_s13, 4294967168  ;;  %p28_p10 = scmp.ge.s32.totalorder %s1655_s24, 4   ;;  %s1915_s17 = smov %s1434_s18 }
 0x400   : > { %s1916_s18 = smov %s1438_s19  ;;  %s1917_s19 = smov %s1665_s11 }
 0x401   : > { %s1918_s20 = smov %s1655_s24  ;;  %30 = sbr.rel (!%p28_p10) target bundleno = 15 (0xf), region = 134 }
 0x408   :  { %902 = vsyncpa [#allocation3], 1 }
 0x409   :  { %904 = vsyncpa [#allocation3 + $0x1], 1 }
 0x40a   :  { %905 = vsyncpa [#allocation6], 1 }
 0x40b   :  { %907 = vsyncpa [#allocation6 + $0x1], 1 }
 0x40c   :  { %908 = vsyncpa [#allocation9], 1 }
 0x40d   :  { %909 = vsyncpa [#allocation4], 1 }
 0x40e   :  { %911 = vsyncpa [#allocation4 + $0x1], 1 }

</bundles_post_ra>
